<compile_context>
chip_gen: v5e
topology: v5e:2x2
jax: 0.10.0
libtpu: 0.0.40
codegen_flags: <defaults>
</compile_context>

<pallas_src>
import functools
import math

import jax
import jax.numpy as jnp
from jax.experimental import pallas as pl
from jax.experimental.pallas import tpu as pltpu


def _round_up(n: int, m: int) -> int:
    return ((n + m - 1) // m) * m


def _cdiv(a: int, b: int) -> int:
    return -(-a // b)


def _compute_default_rope_parameters(dim: int, base: float = 10000.0):
    # mirrors the torch helper: inv_freq over even indices, attention_scaling=1
    inv_freq = 1.0 / (base ** (jnp.arange(0, dim, 2, dtype=jnp.float32) / dim))
    return inv_freq, 1.0


def _rope_kernel(pos_ref, inv_ref, cos_ref, sin_ref, *, fold, half,
                 attention_scaling):
    # pos_ref : (TS, fold)        int32 -- `fold` original rows packed per kernel row
    # inv_ref : (1, half)         f32   -- inv_freq (D/2 unique frequencies)
    # cos_ref / sin_ref : (TS, fold*2*half) out dtype, lane-dense
    pos = pos_ref[...].astype(jnp.float32)            # (TS, fold)
    inv = inv_ref[...]                                 # (1, half)

    # Unique half-angles, packed lane-dense: (TS, fold*half), fold*half % 128 == 0.
    if fold == 1:
        ang = pos * inv                                # (TS, half)
    else:
        ang = jnp.concatenate(
            [pos[:, j:j + 1] * inv for j in range(fold)], axis=-1)

    # cos/sin only on the D/2 unique angles -> half the transcendental work.
    # (A hand-fused sincos sharing the range reduction would shave more VALU.)
    c = jnp.cos(ang)
    s = jnp.sin(ang)
    if attention_scaling != 1.0:                       # statically skipped for default rope
        c = c * attention_scaling
        s = s * attention_scaling

    def dup(v):
        # Duplicate every `half`-wide lane group -> [h | h] (cat([freqs, freqs])).
        # Pure lane copies / shifts -> XLU slot, which is otherwise idle here.
        if fold == 1:
            return jnp.concatenate([v, v], axis=-1)
        parts = []
        for j in range(fold):
            g = v[:, j * half:(j + 1) * half]
            parts.append(g)
            parts.append(g)
        return jnp.concatenate(parts, axis=-1)

    cos_ref[...] = dup(c).astype(cos_ref.dtype)
    sin_ref[...] = dup(s).astype(sin_ref.dtype)


class LlamaRotaryEmbeddingPallas:
    def __init__(self, hidden_size, num_attention_heads, max_position_embeddings,
                 rope_theta=10000.0, block_rows=1024):
        self.max_seq_len_cached = max_position_embeddings
        self.original_max_seq_len = max_position_embeddings
        partial_rotary_factor = 1.0
        head_dim = hidden_size // num_attention_heads
        self.dim = int(head_dim * partial_rotary_factor)
        assert self.dim % 2 == 0, "rotary dim must be even"
        inv_freq, self.attention_scaling = _compute_default_rope_parameters(
            self.dim, rope_theta)
        self.inv_freq = inv_freq                         # (D/2,)
        self.half = self.dim // 2

        # Fold rows so both the unique-angle width (fold*D/2) and the output
        # width (fold*D) are multiples of 128 -> full vregs & unmasked stores.
        self.fold = 128 // math.gcd(self.half, 128)
        self.inv_half = inv_freq.reshape(1, self.half)   # (1, D/2) f32
        self.block_rows = int(block_rows)                # max folded rows per grid step

    def __call__(self, x, position_ids):
        # x is only consulted for its dtype (matches the torch module)
        B, S = position_ids.shape
        D, H, fold = self.dim, self.half, self.fold
        half_w = fold * H
        lane_w = fold * D
        out_dtype = x.dtype
        out_itemsize = jnp.dtype(out_dtype).itemsize

        total = B * S
        rows = _cdiv(total, fold)                        # folded rows needed

        # Tile size: multiple of 8 sublanes, capped by block_rows, and split
        # into >= 2 tiles whenever there is enough work (v7x: 2 TensorCores).
        if rows >= 16:
            ts = min(self.block_rows, _round_up(_cdiv(rows, 2), 8))
        else:
            ts = 8
        ts = max(8, _round_up(ts, 8))

        out_rows = max(rows, ts)                         # padded only for tiny inputs
        n_tiles = _cdiv(out_rows, ts)                    # last block may be partial
        padded_total = out_rows * fold

        pos_flat = position_ids.reshape(total).astype(jnp.int32)
        if padded_total != total:                        # only pad when misaligned
            pos_flat = jnp.pad(pos_flat, (0, padded_total - total))
        pos_folded = pos_flat.reshape(out_rows, fold)

        kernel = functools.partial(
            _rope_kernel, fold=fold, half=H,
            attention_scaling=float(self.attention_scaling))

        cost = pl.CostEstimate(
            flops=int(4 * out_rows * half_w),
            transcendentals=int(2 * out_rows * half_w),
            bytes_accessed=int(out_rows * fold * 4 + H * 4
                               + 2 * out_rows * lane_w * out_itemsize),
        )

        # Double-buffered outputs/inputs + f32 intermediates (half + full width).
        need = (2 * 2 * ts * lane_w * out_itemsize
                + 2 * ts * fold * 4
                + ts * (3 * half_w + 2 * lane_w) * 4
                + (1 << 20))
        vmem_limit = int(min(max(2 * need, 32 << 20), 64 << 20))

        cos_p, sin_p = pl.pallas_call(
            kernel,
            out_shape=(
                jax.ShapeDtypeStruct((out_rows, lane_w), out_dtype),
                jax.ShapeDtypeStruct((out_rows, lane_w), out_dtype),
            ),
            grid_spec=pltpu.PrefetchScalarGridSpec(
                num_scalar_prefetch=0,
                grid=(n_tiles,),
                in_specs=[
                    pl.BlockSpec((ts, fold), lambda i: (i, 0)),
                    pl.BlockSpec((1, H), lambda i: (0, 0)),
                ],
                out_specs=(
                    pl.BlockSpec((ts, lane_w), lambda i: (i, 0)),
                    pl.BlockSpec((ts, lane_w), lambda i: (i, 0)),
                ),
            ),
            compiler_params=pltpu.CompilerParams(
                dimension_semantics=("parallel",),       # shard tiles across TCs (v7x)
                vmem_limit_bytes=vmem_limit),
            cost_estimate=cost,
        )(pos_folded, self.inv_half)

        # (out_rows, fold*D) has the same row-major layout as (padded_total, D).
        if padded_total == total:                        # common case: no slice, no copy
            cos = cos_p.reshape(B, S, D)
            sin = sin_p.reshape(B, S, D)
        else:
            cos = cos_p.reshape(padded_total, D)[:total].reshape(B, S, D)
            sin = sin_p.reshape(padded_total, D)[:total].reshape(B, S, D)
        return cos, sin


def _reference(inv_freq, attention_scaling, x, position_ids):
    # pure-JAX reference reproducing the torch forward exactly
    pos = position_ids.astype(jnp.float32)                       # (B, S)
    freqs = pos[:, :, None] * inv_freq[None, None, :]            # (B, S, D/2)
    emb = jnp.concatenate([freqs, freqs], axis=-1)               # (B, S, D)
    cos = (jnp.cos(emb) * attention_scaling).astype(x.dtype)
    sin = (jnp.sin(emb) * attention_scaling).astype(x.dtype)
    return cos, sin


if __name__ == "__main__":
    key = jax.random.PRNGKey(0)

    # ---- test 1: small config, head_dim=32 -> half=16, fold=8 (folded path) ----
    B, S, HIDDEN, HEADS = 2, 8, 64, 2
    rope = LlamaRotaryEmbeddingPallas(
        hidden_size=HIDDEN, num_attention_heads=HEADS,
        max_position_embeddings=128, rope_theta=10000.0)

    x = jax.random.normal(key, (B, S, HIDDEN), dtype=jnp.float32)
    position_ids = jnp.broadcast_to(jnp.arange(S, dtype=jnp.int32)[None, :], (B, S))

    cos, sin = jax.block_until_ready(rope(x, position_ids))
    cos_ref, sin_ref = _reference(rope.inv_freq, rope.attention_scaling, x, position_ids)
    assert cos.shape == (B, S, rope.dim) and sin.shape == (B, S, rope.dim)
    assert cos.dtype == x.dtype and sin.dtype == x.dtype
    assert jnp.allclose(cos, cos_ref, atol=1e-4, rtol=1e-4)
    assert jnp.allclose(sin, sin_ref, atol=1e-4, rtol=1e-4)

    # ---- test 2: head_dim=128 (real LLaMA), bf16, 2-tile grid, no-pad/no-slice path ----
    B2, S2, HIDDEN2, HEADS2 = 2, 128, 512, 4
    rope2 = LlamaRotaryEmbeddingPallas(
        hidden_size=HIDDEN2, num_attention_heads=HEADS2,
        max_position_embeddings=2048, rope_theta=10000.0,
        block_rows=64)                                           # forces a 2-step grid
    x2 = jax.random.normal(key, (B2, S2, HIDDEN2), dtype=jnp.bfloat16)
    position_ids2 = jnp.broadcast_to(
        jnp.arange(S2, dtype=jnp.int32)[None, :], (B2, S2))

    cos2, sin2 = jax.block_until_ready(rope2(x2, position_ids2))
    cos2_ref, sin2_ref = _reference(rope2.inv_freq, rope2.attention_scaling, x2,
                                    position_ids2)
    assert cos2.shape == (B2, S2, rope2.dim) and cos2.dtype == jnp.bfloat16
    assert jnp.allclose(cos2.astype(jnp.float32), cos2_ref.astype(jnp.float32),
                        atol=2e-2, rtol=2e-2)
    assert jnp.allclose(sin2.astype(jnp.float32), sin2_ref.astype(jnp.float32),
                        atol=2e-2, rtol=2e-2)

    print("KERNEL_OK")
</pallas_src>

<mosaic_0001>
module attributes {stable_mosaic.version = 11 : i64} {
  func.func @_rope_kernel(%arg0: i32, %arg1: memref<8x8xi32, #tpu.memory_space<vmem>>, %arg2: memref<1x16xf32, #tpu.memory_space<vmem>>, %arg3: memref<8x256xf32, #tpu.memory_space<vmem>>, %arg4: memref<8x256xf32, #tpu.memory_space<vmem>>) attributes {dimension_semantics = [#tpu.dimension_semantics<parallel>], iteration_bounds = array<i64: 1>, scalar_prefetch = 0 : i64, scratch_operands = 0 : i64, tpu.core_type = #tpu.core_type<tc>, window_params = [{transform_indices = @transform_0, window_bounds = array<i64: 8, 8>}, {pipeline_mode = #tpu.pipeline_mode<synchronous>, transform_indices = @transform_1, window_bounds = array<i64: 1, 16>}, {transform_indices = @transform_2, window_bounds = array<i64: 8, 256>}, {transform_indices = @transform_3, window_bounds = array<i64: 8, 256>}]} {
    %c0 = arith.constant 0 : index
    %c0_0 = arith.constant 0 : index
    %0 = vector.load %arg1[%c0, %c0_0] : memref<8x8xi32, #tpu.memory_space<vmem>>, vector<8x8xi32>
    %1 = arith.sitofp %0 : vector<8x8xi32> to vector<8x8xf32>
    %c0_1 = arith.constant 0 : index
    %c0_2 = arith.constant 0 : index
    %2 = vector.load %arg2[%c0_1, %c0_2] : memref<1x16xf32, #tpu.memory_space<vmem>>, vector<1x16xf32>
    %3 = vector.extract_strided_slice %1 {offsets = [0, 0], sizes = [8, 1], strides = [1, 1]} : vector<8x8xf32> to vector<8x1xf32>
    %4 = vector.broadcast %3 : vector<8x1xf32> to vector<8x16xf32>
    %5 = vector.broadcast %2 : vector<1x16xf32> to vector<8x16xf32>
    %6 = arith.mulf %4, %5 : vector<8x16xf32>
    %7 = vector.extract_strided_slice %1 {offsets = [0, 1], sizes = [8, 1], strides = [1, 1]} : vector<8x8xf32> to vector<8x1xf32>
    %8 = vector.broadcast %7 : vector<8x1xf32> to vector<8x16xf32>
    %9 = vector.broadcast %2 : vector<1x16xf32> to vector<8x16xf32>
    %10 = arith.mulf %8, %9 : vector<8x16xf32>
    %11 = vector.extract_strided_slice %1 {offsets = [0, 2], sizes = [8, 1], strides = [1, 1]} : vector<8x8xf32> to vector<8x1xf32>
    %12 = vector.broadcast %11 : vector<8x1xf32> to vector<8x16xf32>
    %13 = vector.broadcast %2 : vector<1x16xf32> to vector<8x16xf32>
    %14 = arith.mulf %12, %13 : vector<8x16xf32>
    %15 = vector.extract_strided_slice %1 {offsets = [0, 3], sizes = [8, 1], strides = [1, 1]} : vector<8x8xf32> to vector<8x1xf32>
    %16 = vector.broadcast %15 : vector<8x1xf32> to vector<8x16xf32>
    %17 = vector.broadcast %2 : vector<1x16xf32> to vector<8x16xf32>
    %18 = arith.mulf %16, %17 : vector<8x16xf32>
    %19 = vector.extract_strided_slice %1 {offsets = [0, 4], sizes = [8, 1], strides = [1, 1]} : vector<8x8xf32> to vector<8x1xf32>
    %20 = vector.broadcast %19 : vector<8x1xf32> to vector<8x16xf32>
    %21 = vector.broadcast %2 : vector<1x16xf32> to vector<8x16xf32>
    %22 = arith.mulf %20, %21 : vector<8x16xf32>
    %23 = vector.extract_strided_slice %1 {offsets = [0, 5], sizes = [8, 1], strides = [1, 1]} : vector<8x8xf32> to vector<8x1xf32>
    %24 = vector.broadcast %23 : vector<8x1xf32> to vector<8x16xf32>
    %25 = vector.broadcast %2 : vector<1x16xf32> to vector<8x16xf32>
    %26 = arith.mulf %24, %25 : vector<8x16xf32>
    %27 = vector.extract_strided_slice %1 {offsets = [0, 6], sizes = [8, 1], strides = [1, 1]} : vector<8x8xf32> to vector<8x1xf32>
    %28 = vector.broadcast %27 : vector<8x1xf32> to vector<8x16xf32>
    %29 = vector.broadcast %2 : vector<1x16xf32> to vector<8x16xf32>
    %30 = arith.mulf %28, %29 : vector<8x16xf32>
    %31 = vector.extract_strided_slice %1 {offsets = [0, 7], sizes = [8, 1], strides = [1, 1]} : vector<8x8xf32> to vector<8x1xf32>
    %32 = vector.broadcast %31 : vector<8x1xf32> to vector<8x16xf32>
    %33 = vector.broadcast %2 : vector<1x16xf32> to vector<8x16xf32>
    %34 = arith.mulf %32, %33 : vector<8x16xf32>
    %35 = tpu.concatenate %6, %10, %14, %18, %22, %26, %30, %34 in 1 : vector<8x16xf32>, vector<8x16xf32>, vector<8x16xf32>, vector<8x16xf32>, vector<8x16xf32>, vector<8x16xf32>, vector<8x16xf32>, vector<8x16xf32> -> vector<8x128xf32>
    %36 = math.cos %35 : vector<8x128xf32>
    %37 = math.sin %35 : vector<8x128xf32>
    %38 = vector.extract_strided_slice %36 {offsets = [0, 0], sizes = [8, 16], strides = [1, 1]} : vector<8x128xf32> to vector<8x16xf32>
    %39 = vector.extract_strided_slice %36 {offsets = [0, 16], sizes = [8, 16], strides = [1, 1]} : vector<8x128xf32> to vector<8x16xf32>
    %40 = vector.extract_strided_slice %36 {offsets = [0, 32], sizes = [8, 16], strides = [1, 1]} : vector<8x128xf32> to vector<8x16xf32>
    %41 = vector.extract_strided_slice %36 {offsets = [0, 48], sizes = [8, 16], strides = [1, 1]} : vector<8x128xf32> to vector<8x16xf32>
    %42 = vector.extract_strided_slice %36 {offsets = [0, 64], sizes = [8, 16], strides = [1, 1]} : vector<8x128xf32> to vector<8x16xf32>
    %43 = vector.extract_strided_slice %36 {offsets = [0, 80], sizes = [8, 16], strides = [1, 1]} : vector<8x128xf32> to vector<8x16xf32>
    %44 = vector.extract_strided_slice %36 {offsets = [0, 96], sizes = [8, 16], strides = [1, 1]} : vector<8x128xf32> to vector<8x16xf32>
    %45 = vector.extract_strided_slice %36 {offsets = [0, 112], sizes = [8, 16], strides = [1, 1]} : vector<8x128xf32> to vector<8x16xf32>
    %46 = tpu.concatenate %38, %38, %39, %39, %40, %40, %41, %41, %42, %42, %43, %43, %44, %44, %45, %45 in 1 : vector<8x16xf32>, vector<8x16xf32>, vector<8x16xf32>, vector<8x16xf32>, vector<8x16xf32>, vector<8x16xf32>, vector<8x16xf32>, vector<8x16xf32>, vector<8x16xf32>, vector<8x16xf32>, vector<8x16xf32>, vector<8x16xf32>, vector<8x16xf32>, vector<8x16xf32>, vector<8x16xf32>, vector<8x16xf32> -> vector<8x256xf32>
    %c0_3 = arith.constant 0 : index
    %c0_4 = arith.constant 0 : index
    %47 = vector.load %arg3[%c0_3, %c0_4] : memref<8x256xf32, #tpu.memory_space<vmem>>, vector<8x256xf32>
    tpu.vector_store %arg3[%c0_3, %c0_4], %46 {strides = array<i32>} : memref<8x256xf32, #tpu.memory_space<vmem>>, vector<8x256xf32>,
    %48 = vector.extract_strided_slice %37 {offsets = [0, 0], sizes = [8, 16], strides = [1, 1]} : vector<8x128xf32> to vector<8x16xf32>
    %49 = vector.extract_strided_slice %37 {offsets = [0, 16], sizes = [8, 16], strides = [1, 1]} : vector<8x128xf32> to vector<8x16xf32>
    %50 = vector.extract_strided_slice %37 {offsets = [0, 32], sizes = [8, 16], strides = [1, 1]} : vector<8x128xf32> to vector<8x16xf32>
    %51 = vector.extract_strided_slice %37 {offsets = [0, 48], sizes = [8, 16], strides = [1, 1]} : vector<8x128xf32> to vector<8x16xf32>
    %52 = vector.extract_strided_slice %37 {offsets = [0, 64], sizes = [8, 16], strides = [1, 1]} : vector<8x128xf32> to vector<8x16xf32>
    %53 = vector.extract_strided_slice %37 {offsets = [0, 80], sizes = [8, 16], strides = [1, 1]} : vector<8x128xf32> to vector<8x16xf32>
    %54 = vector.extract_strided_slice %37 {offsets = [0, 96], sizes = [8, 16], strides = [1, 1]} : vector<8x128xf32> to vector<8x16xf32>
    %55 = vector.extract_strided_slice %37 {offsets = [0, 112], sizes = [8, 16], strides = [1, 1]} : vector<8x128xf32> to vector<8x16xf32>
    %56 = tpu.concatenate %48, %48, %49, %49, %50, %50, %51, %51, %52, %52, %53, %53, %54, %54, %55, %55 in 1 : vector<8x16xf32>, vector<8x16xf32>, vector<8x16xf32>, vector<8x16xf32>, vector<8x16xf32>, vector<8x16xf32>, vector<8x16xf32>, vector<8x16xf32>, vector<8x16xf32>, vector<8x16xf32>, vector<8x16xf32>, vector<8x16xf32>, vector<8x16xf32>, vector<8x16xf32>, vector<8x16xf32>, vector<8x16xf32> -> vector<8x256xf32>
    %c0_5 = arith.constant 0 : index
    %c0_6 = arith.constant 0 : index
    %57 = vector.load %arg4[%c0_5, %c0_6] : memref<8x256xf32, #tpu.memory_space<vmem>>, vector<8x256xf32>
    tpu.vector_store %arg4[%c0_5, %c0_6], %56 {strides = array<i32>} : memref<8x256xf32, #tpu.memory_space<vmem>>, vector<8x256xf32>,
    return
  }
  func.func @transform_0(%arg0: i32) -> (i32, i32) {
    %c0_i32 = arith.constant 0 : i32
    %c0_i32_0 = arith.constant 0 : i32
    return %arg0, %c0_i32 : i32, i32
  }
  func.func @transform_1(%arg0: i32) -> (i32, i32) {
    %c0_i32 = arith.constant 0 : i32
    %c0_i32_0 = arith.constant 0 : i32
    %c0_i32_1 = arith.constant 0 : i32
    return %c0_i32, %c0_i32_0 : i32, i32
  }
  func.func @transform_2(%arg0: i32) -> (i32, i32) {
    %c0_i32 = arith.constant 0 : i32
    %c0_i32_0 = arith.constant 0 : i32
    return %arg0, %c0_i32 : i32, i32
  }
  func.func @transform_3(%arg0: i32) -> (i32, i32) {
    %c0_i32 = arith.constant 0 : i32
    %c0_i32_0 = arith.constant 0 : i32
    return %arg0, %c0_i32 : i32, i32
  }
}

</mosaic_0001>

<bundles_post_ra>
// kernel: tpu_custom_call.1
= control target key start
LH: loop header
LB: loop body
LE: loop exit
PB: predicated region body
PF: predicated region fallthrough
CT: control target
= control target key end

     0   :  { %9 = vsyncpa [#allocation3], 0  ;;  %s870_s0 = inlined_call_operand.hbm [shape: s32[8,8], index: 0, kind: input, shape index: {}]   ;;  %s871_s1 = inlined_call_operand.hbm [shape: f32[1,16], index: 1, kind: input, shape index: {}]   ;;  %s872_s2 = inlined_call_operand.hbm [shape: f32[8,256], index: 2, kind: output, shape index: {0}]   ;;  %s873_s3 = inlined_call_operand.hbm [shape: f32[8,256], index: 3, kind: output, shape index: {1}]  }
   0x1   :  { %10 = vsyncpa [#allocation6], 0 }
   0x2   :  { %11 = vsyncpa [#allocation4], 0 }
   0x3   :  { %12 = vsyncpa [#allocation9], 0  ;;  %s18_s14 = sshll.u32 %s870_s0, 4  ;;  %s696_s15 = smov [#allocation2]   ;;  %s19_s14 = int_to_ptr.hbm [resolvable:$true] %s18_s14 }
   0x4   :  { %s20_s16 = sshll.u32 %s696_s15, 4  ;;  %s29_s19 = sshll.u32 %s871_s1, 4  ;;  %s21_s16 = int_to_ptr.vmem [resolvable:$true] %s20_s16  ;;  %s30_s19 = int_to_ptr.hbm [resolvable:$true] %s29_s19 }
   0x5   :  { %23 = dma.hbm_to_vmem [thread:$0]  %s19_s14, 128, %s21_s16, [#allocation3]  }
   0x6   :  { %s697_s20 = smov [#allocation5]  }
   0x7   :  { %s31_s21 = sshll.u32 %s697_s20, 4  ;;  %s32_s21 = int_to_ptr.vmem [resolvable:$true] %s31_s21 }
   0x8   :  { %34 = dma.hbm_to_vmem [thread:$0]  %s30_s19, 16, %s32_s21, [#allocation6]  }
   0x9   :  { %688 = dma.done.wait [#allocation3], 128  }
   0xa   :  { %689 = vsyncadd [#allocation3], 4294967168 }
   0xb   :  { %690 = dma.done.wait [#allocation6], 16  }
   0xc   :  { %691 = vsyncadd [#allocation6], 4294967280  ;;  %v698_v0 = vmov 1   ;;  %v699_v1 = vmov 3   ;;  %v700_v2 = vmov 5   ;;  %v43_v3 = vld [vmem:[#allocation2] sm:$0xff] }
   0xd   :  { %582 = vset.pattern.permute.xlu0 %v698_v0  ;;  %584 = vset.pattern.permute.xlu1 %v699_v1  ;;  %v44_v4 = vcvt.s32.f32 %v43_v3  ;;  %v701_v5 = vmov 2   ;;  %v702_v6 = vmov 4   ;;  %v703_v7 = vmov 6   ;;  %v591_v11 = vld [vmem:[#allocation5] ss:$0 sm:$0xff]  ;;  %s706_s0 = smov 16  }
   0xe   :  { %586 = vset.pattern.permute.xlu2 %v700_v2  ;;  %v704_v8 = vmov 7   ;;  %v705_v9 = vmov 0   ;;  %s707_s1 = smov 48   ;;  %s708_s22 = smov 96   ;;  %vm118_vm0 = vcmask 130048   ;;  %vm120_vm1 = vcmask 261120  }
   0xf   :  { %56 = vperm.xlu0 %582, %v44_v4   ;;  %66 = vperm.xlu1 %584, %v44_v4   ;;  %s709_s23 = smov 32   ;;  %s710_s24 = smov 64   ;;  %vm122_vm2 = vcmask 392192   ;;  %vm124_vm3 = vcmask 523264   ;;  %vm126_vm4 = vcmask 654336   ;;  %vm128_vm5 = vcmask 785408  }
  0x10   :  { %76 = vperm.xlu2 %586, %v44_v4   ;;  %s711_s25 = smov 80   ;;  %s712_s26 = smov 112   ;;  %vm130_vm6 = vcmask 916480   ;;  %v713_v52 = vmov 683565275  }
  0x11   :  { %v714_v54 = vmov 2475754826   ;;  %v715_v57 = vmov 2131351028   ;;  %v716_v60 = vmov 2102212464  }
  0x12   :  { %v717_v63 = vmov 920167782   ;;  %v718_v2 = vmov 1326507024   ;;  %s719_s27 = smov [#allocation7]   ;;  %s524_s4 = sshll.u32 %s872_s2, 4  ;;  %s525_s4 = int_to_ptr.hbm [resolvable:$true] %s524_s4 }
  0x13   :  { %s522_s28 = sshll.u32 %s719_s27, 4  ;;  %s720_s2 = smov [#allocation8]   ;;  %s523_s28 = int_to_ptr.vmem [resolvable:$true] %s522_s28 }
  0x14   :  { %s533_s5 = sshll.u32 %s720_s2, 4  ;;  %s535_s8 = sshll.u32 %s873_s3, 4  ;;  %s534_s5 = int_to_ptr.vmem [resolvable:$true] %s533_s5  ;;  %s536_s8 = int_to_ptr.hbm [resolvable:$true] %s535_s8 }
  0x17   :  { %583 = vset.pattern.permute.xlu0 %v701_v5  ;;  %585 = vset.pattern.permute.xlu1 %v702_v6 }
  0x18   :  { %61 = vperm.xlu0 %583, %v44_v4   ;;  %71 = vperm.xlu1 %585, %v44_v4  }
  0x19   :  { %587 = vset.pattern.permute.xlu2 %v703_v7 }
  0x1a   :  { %81 = vperm.xlu2 %587, %v44_v4  }
  0x20   :  { %588 = vset.pattern.permute.xlu1 %v704_v8  ;;  %590 = vset.pattern.permute.xlu0 %v704_v8 }
  0x21   :  { %86 = vperm.xlu1 %588, %v44_v4  }
  0x22   :  { %589 = vset.pattern.permute.xlu2 %v705_v9 }
  0x23   :  { %48 = vperm.xlu2 %589, %v44_v4  }
  0x6a   :  { %v77_v10 = vpop.permute.xlu2 %76 }
  0x6b   :  { %v79_v22 = vmul.f32 %v591_v11, %v77_v10 }
  0x74   :  { %v82_v16 = vpop.permute.xlu2 %81 }
  0x75   :  { %v84_v17 = vmul.f32 %v591_v11, %v82_v16 }
  0x7d   :  { %v49_v25 = vpop.permute.xlu2 %48 }
  0x7e   :  { %v54_v27 = vmul.f32 %v591_v11, %v49_v25 }
  0x81   :  { %v57_v12 = vpop.permute.xlu0 %56  ;;  %v67_v13 = vpop.permute.xlu1 %66 }
  0x82   :  { %v59_v14 = vmul.f32 %v591_v11, %v57_v12  ;;  %v69_v15 = vmul.f32 %v591_v11, %v67_v13 }
  0x84   :  { %91 = vrot.lane.b32.xlu0 %v59_v14, %s706_s0  ;;  %99 = vrot.lane.b32.xlu2 %v69_v15, %s707_s1 }
  0x8a   :  { %v62_v18 = vpop.permute.xlu0 %61  ;;  %v72_v19 = vpop.permute.xlu1 %71 }
  0x8b   :  { %v64_v20 = vmul.f32 %v591_v11, %v62_v18  ;;  %v74_v21 = vmul.f32 %v591_v11, %v72_v19 }
  0x8c   :  { %111 = vrot.lane.b32.xlu2 %v84_v17, %s708_s22 }
  0x8d   :  { %95 = vrot.lane.b32.xlu1 %v64_v20, %s709_s23  ;;  %103 = vrot.lane.b32.xlu0 %v74_v21, %s710_s24 }
  0x93   :  { %v87_v23 = vpop.permute.xlu1 %86 }
  0x94   :  { %v89_v24 = vmul.f32 %v591_v11, %v87_v23 }
  0x95   :  { %107 = vrot.lane.b32.xlu1 %v79_v22, %s711_s25 }
  0x96   :  { %115 = vrot.lane.b32.xlu0 %v89_v24, %s712_s26 }
  0xde   :  { %v100_v28 = vpop.permute.xlu2 %99 }
  0xe6   :  { %v112_v34 = vpop.permute.xlu2 %111 }
  0xf6   :  { %v92_v26 = vpop.permute.xlu0 %91 }
  0xf7   :  { %v119_v31 = vsel %vm118_vm0, %v54_v27, %v92_v26 }
  0xff   :  { %v96_v29 = vpop.permute.xlu1 %95  ;;  %v104_v30 = vpop.permute.xlu0 %103 }
 0x100   :  { %v121_v32 = vsel %vm120_vm1, %v119_v31, %v96_v29 }
 0x101   :  { %v123_v33 = vsel %vm122_vm2, %v121_v32, %v100_v28 }
 0x102   :  { %v125_v35 = vsel %vm124_vm3, %v123_v33, %v104_v30 }
 0x107   :  { %v108_v36 = vpop.permute.xlu1 %107 }
 0x108   :  { %v127_v37 = vsel %vm126_vm4, %v125_v35, %v108_v36  ;;  %v116_v38 = vpop.permute.xlu0 %115 }
 0x109   :  { %v129_v39 = vsel %vm128_vm5, %v127_v37, %v112_v34 }
 0x10a   :  { %v762_v40 = vsel %vm130_vm6, %v129_v39, %v116_v38 }
 0x10b   :  { %v135_v41 = vand.u32 2139095040, %v762_v40  ;;  %v132_v44 = vand.u32 2147483647, %v762_v40 }
 0x10d   :  { %v136_v42 = vshrl.u32 %v135_v41, 23  ;;  %v139_v46 = vand.u32 8388607, %v132_v44 }
 0x10f   :  { %v551_v43 = vadd.s32 4294967169, %v136_v42  ;;  %v140_v50 = vor.u32 8388608, %v139_v46 }
 0x111   :  { %v142_v45 = vadd.s32 1, %v551_v43  ;;  %v779_v10 = vshll.u32 %v140_v50, 8 }
 0x113   :  { %vm143_vm7 = vcmp.gt.s32.totalorder %v142_v45, 0  ;;  %v181_v19 = vand.u32 65535, %v779_v10  ;;  %v182_v20 = vshrl.u32 %v779_v10, 16 }
 0x114   :  { %v144_v47 = vsel %vm143_vm7, %v142_v45, 0 }
 0x115   :  { %v146_v48 = vand.u32 31, %v144_v47  ;;  %v770_v51 = vshrl.u32 %v144_v47, 5 }
 0x117   :  { %v768_v49 = vsub.s32 32, %v146_v48  ;;  %v149_v53 = vshll.u32 %v713_v52, %v146_v48  ;;  %v152_v55 = vshll.u32 %v714_v54, %v146_v48  ;;  %v155_v59 = vshll.u32 %v715_v57, %v146_v48 }
 0x118   :  { %v158_v62 = vshll.u32 %v716_v60, %v146_v48  ;;  %v161_v1 = vshll.u32 %v717_v63, %v146_v48  ;;  %vm164_vm8 = vcmp.lt.s32.totalorder %v770_v51, 1  ;;  %vm167_vm9 = vcmp.lt.s32.totalorder %v770_v51, 4 }
 0x119   :  { %v150_v56 = vshrl.u32 %v714_v54, %v768_v49  ;;  %v153_v58 = vshrl.u32 %v715_v57, %v768_v49  ;;  %v156_v61 = vshrl.u32 %v716_v60, %v768_v49  ;;  %v159_v0 = vshrl.u32 %v717_v63, %v768_v49 }
 0x11a   :  { %v162_v3 = vshrl.u32 %v718_v2, %v768_v49  ;;  %vm166_vm10 = vcmp.lt.s32.totalorder %v770_v51, 3  ;;  %vm165_vm11 = vcmp.lt.s32.totalorder %v770_v51, 2  ;;  %v148_v47 = vshrl.u32 %v713_v52, %v768_v49 }
 0x11b   :  { %v151_v4 = vor.u32 %v150_v56, %v149_v53  ;;  %v154_v5 = vor.u32 %v153_v58, %v152_v55  ;;  %v157_v6 = vor.u32 %v156_v61, %v155_v59  ;;  %v160_v7 = vor.u32 %v159_v0, %v158_v62 }
 0x11c   :  { %v163_v8 = vor.u32 %v162_v3, %v161_v1 }
 0x11d   :  { %v172_v11 = vsel %vm164_vm8, %v151_v4, %v154_v5  ;;  %v176_v12 = vsel %vm164_vm8, %v154_v5, %v157_v6  ;;  %v173_v13 = vsel %vm167_vm9, %v160_v7, 920167782  ;;  %v169_v43 = vsel %vm167_vm9, %v157_v6, 2102212464 }
 0x11e   :  { %v177_v14 = vsel %vm167_vm9, %v163_v8, 1326507024  ;;  %v174_v15 = vsel %vm166_vm10, %v157_v6, %v173_v13  ;;  %v168_v56 = vsel %vm164_vm8, %v148_v47, %v151_v4  ;;  %v170_v57 = vsel %vm166_vm10, %v154_v5, %v169_v43 }
 0x11f   :  { %v178_v16 = vsel %vm166_vm10, %v160_v7, %v177_v14  ;;  %v175_v17 = vsel %vm165_vm11, %v172_v11, %v174_v15  ;;  %v171_v49 = vsel %vm165_vm11, %v168_v56, %v170_v57  ;;  %vm134_vm10 = vcmp.lt.s32.totalorder %v762_v40, 0 }
 0x120   :  { %v179_v18 = vsel %vm165_vm11, %v176_v12, %v178_v16  ;;  %v205_v23 = vand.u32 65535, %v175_v17  ;;  %v206_v24 = vshrl.u32 %v175_v17, 16  ;;  %v225_v0 = vmul.u32 %v779_v10, %v171_v49 }
 0x121   :  { %v183_v21 = vand.u32 65535, %v179_v18  ;;  %v184_v22 = vshrl.u32 %v179_v18, 16  ;;  %vm133_vm11 = vcmp.le.f32.partialorder %v132_v44, 0.7853982 }
 0x122   :  { %v208_v27 = vmul.u32 %v206_v24, %v181_v19  ;;  %v209_v28 = vmul.u32 %v205_v23, %v182_v20  ;;  %v207_v32 = vmul.u32 %v205_v23, %v181_v19  ;;  %v210_v36 = vmul.u32 %v206_v24, %v182_v20 }
 0x123   :  { %v186_v25 = vmul.u32 %v184_v22, %v181_v19  ;;  %v187_v26 = vmul.u32 %v183_v21, %v182_v20  ;;  %v185_v29 = vmul.u32 %v183_v21, %v181_v19  ;;  %v188_v31 = vmul.u32 %v184_v22, %v182_v20 }
 0x124   :  { %v211_v33 = vshll.u32 %v208_v27, 16  ;;  %v213_v38 = vshll.u32 %v209_v28, 16  ;;  %v212_v54 = vshrl.u32 %v208_v27, 16  ;;  %v214_v60 = vshrl.u32 %v209_v28, 16 }
 0x125   :  { %v189_v30 = vshll.u32 %v186_v25, 16  ;;  %v191_v34 = vshll.u32 %v187_v26, 16  ;;  %v190_v48 = vshrl.u32 %v186_v25, 16  ;;  %v192_v58 = vshrl.u32 %v187_v26, 16 }
 0x126   :  { %vm215_vm13 = vc.u32 %v207_v32, %v211_v33  ;;  %v217_v39 = vadd.s32 %v211_v33, %v207_v32 }
 0x127   :  { %vm193_vm12 = vc.u32 %v185_v29, %v189_v30  ;;  %v195_v35 = vadd.s32 %v189_v30, %v185_v29  ;;  %v216_v42 = vsel %vm215_vm13, 1, %v705_v9 }
 0x128   :  { %v194_v37 = vsel %vm193_vm12, 1, %v705_v9  ;;  %v218_v46 = vadd.s32 %v216_v42, %v210_v36  ;;  %vm219_vm15 = vc.u32 %v217_v39, %v213_v38  ;;  %v221_v63 = vadd.s32 %v217_v39, %v213_v38 }
 0x129   :  { %v196_v41 = vadd.s32 %v194_v37, %v188_v31  ;;  %vm197_vm14 = vc.u32 %v195_v35, %v191_v34  ;;  %v220_v53 = vsel %vm219_vm15, 1, %v705_v9  ;;  %vm275_vm15 = vweird.f32 %v762_v40 }
 0x12a   :  { %v198_v45 = vsel %vm197_vm14, 1, %v705_v9  ;;  %v222_v55 = vadd.s32 %v220_v53, %v218_v46 }
 0x12b   :  { %v200_v50 = vadd.s32 %v198_v45, %v196_v41 }
 0x12c   :  { %v223_v61 = vadd.s32 %v222_v55, %v212_v54 }
 0x12d   :  { %v201_v59 = vadd.s32 %v200_v50, %v190_v48 }
 0x12e   :  { %v224_v52 = vadd.s32 %v223_v61, %v214_v60 }
 0x12f   :  { %v202_v62 = vadd.s32 %v201_v59, %v192_v58 }
 0x130   :  { %v228_v9 = vadd.s32 1, %v224_v52 }
 0x131   :  { %vm227_vm7 = vc.u32 %v202_v62, %v221_v63  ;;  %v226_v51 = vadd.s32 %v221_v63, %v202_v62 }
 0x132   :  { %v229_v1 = vsel %vm227_vm7, %v228_v9, %v224_v52 }
 0x133   :  { %v230_v2 = vadd.s32 %v229_v1, %v225_v0 }
 0x135   :  { %v231_v3 = vadd.s32 536870912, %v230_v2 }
 0x137   :  { %v232_v4 = vshrl.u32 %v231_v3, 30 }
 0x139   :  { %v233_v6 = vshll.u32 %v232_v4, 30  ;;  %v256_v30 = vsub.s32 4, %v232_v4 }
 0x13b   :  { %v234_v5 = vsub.s32 %v230_v2, %v233_v6  ;;  %v257_v35 = vsel %vm134_vm10, %v256_v30, %v232_v4 }
 0x13c   :  { %v259_v38 = vsel %vm133_vm11, 0, %v257_v35 }
 0x13d   :  { %vm235_vm8 = vcmp.lt.s32.totalorder %v234_v5, 0  ;;  %v236_v7 = vsub.s32 0, %v234_v5  ;;  %v276_v44 = vand.u32 3, %v259_v38  ;;  %v430_v45 = vadd.s32 3, %v259_v38 }
 0x13f   :  { %v237_v8 = vsel %vm235_vm8, %v236_v7, %v234_v5  ;;  %vm278_vm12 = vcmp.eq.s32.totalorder %v276_v44, 0  ;;  %vm281_vm13 = vcmp.eq.s32.totalorder %v276_v44, 2  ;;  %v431_v50 = vand.u32 3, %v430_v45 }
 0x140   :  { %v238_v11 = vclz %v237_v8  ;;  %vm277_vm14 = vcmp.lt.s32.totalorder %v276_v44, 2 }
 0x141   :  { %vm433_vm7 = vcmp.eq.s32.totalorder %v431_v50, 0  ;;  %vm436_vm8 = vcmp.eq.s32.totalorder %v431_v50, 2 }
 0x142   :  { %v552_v12 = vadd.s32 4294967294, %v238_v11 }
 0x144   :  { %vm553_vm9 = vcmp.lt.s32.totalorder %v552_v12, 0 }
 0x145   :  { %v241_v13 = vsel %vm553_vm9, 0, %v552_v12  ;;  %vm432_vm9 = vcmp.lt.s32.totalorder %v431_v50, 2 }
 0x146   :  { %v242_v14 = vsub.s32 32, %v241_v13  ;;  %v246_v15 = vsub.s32 4294967266, %v241_v13  ;;  %v243_v16 = vshll.u32 %v234_v5, %v241_v13 }
 0x148   :  { %v244_v17 = vshrl.u32 %v226_v51, %v242_v14  ;;  %v247_v18 = vadd.s32 127, %v246_v15 }
 0x14a   :  { %v245_v10 = vor.u32 %v244_v17, %v243_v16  ;;  %v248_v19 = vshll.u32 %v247_v18, 23 }
 0x14c   :  { %v249_v20 = vor.u32 4788187, %v248_v19  ;;  %v252_v22 = vcvt.s32.f32 %v245_v10 }
 0x14e   :  { %v250_v21 = vand.u32 2147483647, %v249_v20 }
 0x150   :  { %v253_v23 = vmul.f32 %v252_v22, %v250_v21 }
 0x152   :  { %v254_v24 = vxor.u32 2147483648, %v253_v23 }
 0x154   :  { %v255_v25 = vsel %vm134_vm10, %v254_v24, %v253_v23 }
 0x155   :  { %v258_v26 = vsel %vm133_vm11, %v762_v40, %v255_v25 }
 0x156   :  { %v260_v27 = vmul.f32 %v258_v26, %v258_v26 }
 0x158   :  { %v261_v28 = vmul.f32 -0.001358992, %v260_v27  ;;  %v268_v29 = vmul.f32 -0.00019511016, %v260_v27 }
 0x15a   :  { %v262_v31 = vadd.f32 0.041655596, %v261_v28  ;;  %v269_v32 = vadd.f32 0.008332121, %v268_v29 }
 0x15c   :  { %v263_v33 = vmul.f32 %v262_v31, %v260_v27  ;;  %v270_v34 = vmul.f32 %v269_v32, %v260_v27 }
 0x15e   :  { %v264_v36 = vadd.f32 -0.4999988, %v263_v33  ;;  %v271_v37 = vadd.f32 -0.16666654, %v270_v34 }
 0x160   :  { %v265_v39 = vmul.f32 %v264_v36, %v260_v27  ;;  %v272_v41 = vmul.f32 %v271_v37, %v260_v27 }
 0x162   :  { %v266_v42 = vadd.f32 1.0, %v265_v39  ;;  %v273_v43 = vadd.f32 1.0, %v272_v41 }
 0x164   :  { %v274_v46 = vmul.f32 %v273_v43, %v258_v26  ;;  %v282_v47 = vxor.u32 2147483648, %v266_v42 }
 0x166   :  { %v279_v48 = vxor.u32 2147483648, %v274_v46  ;;  %v283_v54 = vsel %vm281_vm13, %v282_v47, %v274_v46  ;;  %v438_v58 = vsel %vm436_vm8, %v282_v47, %v274_v46 }
 0x168   :  { %v280_v53 = vsel %vm278_vm12, %v266_v42, %v279_v48  ;;  %v435_v57 = vsel %vm433_vm7, %v266_v42, %v279_v48 }
 0x169   :  { %v284_v55 = vsel %vm277_vm14, %v280_v53, %v283_v54  ;;  %v439_v59 = vsel %vm432_vm9, %v435_v57, %v438_v58 }
 0x16a   :  { %v285_v56 = vsel %vm275_vm15, nan, %v284_v55  ;;  %v440_v60 = vsel %vm275_vm15, nan, %v439_v59 }
 0x16b   :  { %454 = vrot.lane.b32.xlu0 %v285_v56, %s711_s25  ;;  %451 = vrot.lane.b32.xlu2 %v285_v56, %s710_s24 }
 0x16c   :  { %442 = vrot.lane.b32.xlu1 %v285_v56, %s706_s0 }
 0x173   :  { %492 = vrot.lane.b32.xlu0 %v440_v60, %s711_s25  ;;  %489 = vrot.lane.b32.xlu2 %v440_v60, %s710_s24 }
 0x174   :  { %480 = vrot.lane.b32.xlu1 %v440_v60, %s706_s0 }
 0x17b   :  { %483 = vrot.lane.b32.xlu0 %v440_v60, %s709_s23  ;;  %457 = vrot.lane.b32.xlu2 %v285_v56, %s708_s22 }
 0x17c   :  { %445 = vrot.lane.b32.xlu1 %v285_v56, %s709_s23 }
 0x183   :  { %460 = vrot.lane.b32.xlu0 %v285_v56, %s712_s26  ;;  %448 = vrot.lane.b32.xlu2 %v285_v56, %s707_s1 }
 0x184   :  { %495 = vrot.lane.b32.xlu1 %v440_v60, %s708_s22 }
 0x18b   :  { %498 = vrot.lane.b32.xlu2 %v440_v60, %s712_s26 }
 0x18c   :  { %486 = vrot.lane.b32.xlu1 %v440_v60, %s707_s1 }
 0x1c5   :  { %v452_v40 = vpop.permute.xlu2 %451 }
 0x1cd   :  { %v490_v61 = vpop.permute.xlu2 %489 }
 0x1d5   :  { %v458_v49 = vpop.permute.xlu2 %457 }
 0x1dd   :  { %v455_v62 = vpop.permute.xlu0 %454  ;;  %v449_v3 = vpop.permute.xlu2 %448 }
 0x1de   :  { %v443_v63 = vpop.permute.xlu1 %442  ;;  %v470_v1 = vsel %vm118_vm0, %v452_v40, %v455_v62 }
 0x1df   :  { %v463_v0 = vsel %vm118_vm0, %v285_v56, %v443_v63  ;;  %v471_v5 = vsel %vm120_vm1, %v470_v1, %v455_v62 }
 0x1e0   :  { %v464_v4 = vsel %vm120_vm1, %v463_v0, %v443_v63  ;;  %v472_v12 = vsel %vm122_vm2, %v471_v5, %v458_v49 }
 0x1e1   :  { %v473_v16 = vsel %vm124_vm3, %v472_v12, %v458_v49 }
 0x1e5   :  { %v493_v52 = vpop.permute.xlu0 %492  ;;  %v499_v22 = vpop.permute.xlu2 %498 }
 0x1e6   :  { %v481_v9 = vpop.permute.xlu1 %480  ;;  %v508_v51 = vsel %vm118_vm0, %v490_v61, %v493_v52 }
 0x1e7   :  { %v509_v17 = vsel %vm120_vm1, %v508_v51, %v493_v52  ;;  %v501_v19 = vsel %vm118_vm0, %v440_v60, %v481_v9 }
 0x1e8   :  { %v502_v26 = vsel %vm120_vm1, %v501_v19, %v481_v9 }
 0x1ed   :  { %v484_v2 = vpop.permute.xlu0 %483 }
 0x1ee   :  { %v446_v6 = vpop.permute.xlu1 %445  ;;  %v503_v28 = vsel %vm122_vm2, %v502_v26, %v484_v2 }
 0x1ef   :  { %v465_v7 = vsel %vm122_vm2, %v464_v4, %v446_v6  ;;  %v504_v30 = vsel %vm124_vm3, %v503_v28, %v484_v2 }
 0x1f0   :  { %v466_v8 = vsel %vm124_vm3, %v465_v7, %v446_v6 }
 0x1f1   :  { %v467_v11 = vsel %vm126_vm4, %v466_v8, %v449_v3 }
 0x1f2   :  { %v468_v13 = vsel %vm128_vm5, %v467_v11, %v449_v3 }
 0x1f3   :  { %v469_v14 = vsel %vm130_vm6, %v468_v13, %v452_v40 }
 0x1f4   :  { %477 = vst [vmem:[#allocation7] sm:$0xff] %v469_v14 }
 0x1f5   :  { %v461_v15 = vpop.permute.xlu0 %460 }
 0x1f6   :  { %v474_v18 = vsel %vm126_vm4, %v473_v16, %v461_v15  ;;  %v496_v10 = vpop.permute.xlu1 %495 }
 0x1f7   :  { %v475_v20 = vsel %vm128_vm5, %v474_v18, %v461_v15  ;;  %v510_v21 = vsel %vm122_vm2, %v509_v17, %v496_v10 }
 0x1f8   :  { %v476_v23 = vsel %vm130_vm6, %v475_v20, %v285_v56  ;;  %v511_v24 = vsel %vm124_vm3, %v510_v21, %v496_v10 }
 0x1f9   :  { %478 = vst [vmem:[#allocation7 + $0x8] sm:$0xff] %v476_v23  ;;  %v512_v25 = vsel %vm126_vm4, %v511_v24, %v499_v22 }
 0x1fa   :  { %v513_v27 = vsel %vm128_vm5, %v512_v25, %v499_v22  ;;  %527 = dma.vmem_to_hbm [thread:$0]  %s523_s28, 256, %s525_s4, [#allocation4]  }
 0x1fb   :  { %v514_v29 = vsel %vm130_vm6, %v513_v27, %v440_v60 }
 0x1fc   :  { %516 = vst [vmem:[#allocation8 + $0x8] sm:$0xff] %v514_v29 }
 0x1fe   :  { %v487_v31 = vpop.permute.xlu1 %486 }
 0x1ff   :  { %v505_v32 = vsel %vm126_vm4, %v504_v30, %v487_v31 }
 0x200   :  { %v506_v33 = vsel %vm128_vm5, %v505_v32, %v487_v31 }
 0x201   :  { %v507_v34 = vsel %vm130_vm6, %v506_v33, %v490_v61 }
 0x202   :  { %515 = vst [vmem:[#allocation8] sm:$0xff] %v507_v34 }
 0x203   :  { %538 = dma.vmem_to_hbm [thread:$0]  %s534_s5, 256, %s536_s8, [#allocation9]  }
 0x204   :  { %692 = dma.done.wait [#allocation4], 256  }
 0x205   :  { %693 = vsyncadd [#allocation4], 4294967040 }
 0x206   :  { %694 = dma.done.wait [#allocation9], 256  }
 0x207   :  { %695 = vsyncadd [#allocation9], 4294967040 }
 0x208   :  { %547 = vsyncpa [#allocation3], 1 }
 0x209   :  { %548 = vsyncpa [#allocation6], 1 }
 0x20a   :  { %549 = vsyncpa [#allocation4], 1 }
 0x20b   :  { %550 = vsyncpa [#allocation9], 1 }

</bundles_post_ra>
